<compile_context>
chip_gen: v5e
topology: v5e:2x2
jax: 0.10.0
libtpu: 0.0.40
codegen_flags: <defaults>
</compile_context>

<pallas_src>
import functools

import jax
import jax.numpy as jnp
from jax.experimental import pallas as pl
from jax.experimental.pallas import tpu as pltpu


# Tile caps re-derived against v7x's 64 MiB VMEM (ample on v5e/v6e's 128 MiB).
_TM_CAP = 256
_TN_CAP = 512
_TK_CAP = 1024
_VMEM_HEADROOM = 2 << 20     # compiler-internal scratch headroom
_VMEM_CEIL = 48 << 20        # keep well under v7x's 64 MiB physical VMEM


def _round_up(x, m):
    return ((x + m - 1) // m) * m


def _nk_tiles(N, K):
    """Lane-dense output tile (tn multiple of 128) and MXU-friendly K tile."""
    tn = min(_round_up(N, 128), _TN_CAP)
    tk = min(_round_up(K, 128), _TK_CAP)
    return tn, tk


def _single_nk_tile(N, K):
    """True if the whole (K, N) weight fits in one VMEM tile -> no N/K tiling."""
    return N <= _TN_CAP and K <= _TK_CAP


def _pick_tm(M, grid_n, m_align):
    """M tile; includes the v7x megacore guard (keep >=2 parallel blocks)."""
    tm = min(_round_up(M, m_align), _TM_CAP)
    if grid_n == 1 and _round_up(M, tm) // tm == 1 and M > 2 * m_align:
        tm = _round_up((M + 1) // 2, m_align)
    return tm


# ----------------------------------------------------------------------------
# Kernels
# ----------------------------------------------------------------------------
def _dense_kernel_fused(x_ref, w_ref, b_ref, o_ref):
    """Whole-K tile: o = sigmoid(x @ w + b).  No accumulator needed."""
    z = jnp.dot(x_ref[...], w_ref[...], preferred_element_type=jnp.float32)
    z = z + b_ref[...]                       # (1, n) broadcasts over rows
    o_ref[...] = jax.nn.sigmoid(z).astype(o_ref.dtype)


def _dense_kernel_acc(x_ref, w_ref, b_ref, o_ref, acc_ref):
    """K-tiled reduction; K is the LAST grid axis; f32 VMEM accumulator."""
    k = pl.program_id(2)

    @pl.when(k == 0)
    def _init():
        acc_ref[...] = jnp.zeros_like(acc_ref)

    # Pure MXU work every k step; accumulate in f32.
    acc_ref[...] += jnp.dot(x_ref[...], w_ref[...],
                            preferred_element_type=jnp.float32)

    @pl.when(k == pl.num_programs(2) - 1)
    def _finalize():
        z = acc_ref[...] + b_ref[...]
        o_ref[...] = jax.nn.sigmoid(z).astype(o_ref.dtype)


# ----------------------------------------------------------------------------
# Parameter preparation (ONCE, at parameter-init time)
# ----------------------------------------------------------------------------
def prepare_dense_params(weight, bias, compute_dtype=None):
    """Transpose, optionally pad, and optionally cast the parameters ONCE.

    Returns (wt, bias2d, n_out, k_in).  Pass n_out / k_in as static kwargs to
    dense_forward_prepared (they recover the unpadded logical shape).
    """
    weight = jnp.asarray(weight)
    N, K = weight.shape
    wt = weight.T                                          # [K, N]
    if compute_dtype is not None:
        wt = wt.astype(compute_dtype)
    if bias is None:
        b = jnp.zeros((N,), dtype=jnp.float32)
    else:
        b = jnp.asarray(bias).astype(jnp.float32)
    b2d = b.reshape(1, N)

    if not _single_nk_tile(N, K):
        # Pad the weight/bias to tile multiples here (one time), not per call.
        tn, tk = _nk_tiles(N, K)
        Kp, Np = _round_up(K, tk), _round_up(N, tn)
        wt = jnp.pad(wt, ((0, Kp - K), (0, Np - N)))
        b2d = jnp.pad(b2d, ((0, 0), (0, Np - N)))
    return wt, b2d, N, K


# ----------------------------------------------------------------------------
# Forward
# ----------------------------------------------------------------------------
@functools.partial(jax.jit, static_argnames=("n_out", "k_in", "compute_dtype"))
def dense_forward_prepared(x, wt, b2d, *, n_out, k_in, compute_dtype=None):
    """y = sigmoid(x @ wt + bias), wt already prepared by prepare_dense_params."""
    M, K = x.shape
    assert K == k_in, "input_features mismatch"
    N = n_out
    out_dtype = x.dtype

    x_c = x.astype(compute_dtype) if compute_dtype is not None else x
    in_isz = jnp.dtype(x_c.dtype).itemsize
    out_isz = jnp.dtype(out_dtype).itemsize
    m_align = 16 if in_isz < 4 else 8        # bf16 packs 16 rows per vreg

    # ---------------- Path 1 & 2: weight fits a single (K, N) tile ----------
    if _single_nk_tile(N, K):
        assert wt.shape == (K, N)

        if M <= _TM_CAP:
            # Tiny fast path: one tile, no grid, no padding, no output slice.
            # Whole arrays are mapped into VMEM; the once-per-call masked store
            # on a narrow N is cheaper than pad + slice HBM round trips.
            return pl.pallas_call(
                _dense_kernel_fused,
                out_shape=jax.ShapeDtypeStruct((M, N), out_dtype),
            )(x_c, wt, b2d)

        # M-only tiling: weight & bias blocks constant across the grid (DMA'd
        # once), x/out tiled over rows.  No N/K padding anywhere.
        tm = _pick_tm(M, 1, m_align)
        Mp = _round_up(M, tm)
        if Mp != M:
            x_c = jnp.pad(x_c, ((0, Mp - M), (0, 0)))

        needed = (2 * tm * K * in_isz            # double-buffered x tiles
                  + 2 * K * N * in_isz           # resident weight (x2 safety)
                  + 2 * 8 * N * 4                # bias block (sublane padded)
                  + 2 * tm * N * out_isz)        # double-buffered out tiles
        vmem_limit = int(min(max(needed + _VMEM_HEADROOM, 16 << 20), _VMEM_CEIL))

        out = pl.pallas_call(
            _dense_kernel_fused,
            out_shape=jax.ShapeDtypeStruct((Mp, N), out_dtype),
            grid=(Mp // tm,),
            in_specs=[
                pl.BlockSpec((tm, K), lambda i: (i, 0)),   # x rows
                pl.BlockSpec((K, N), lambda i: (0, 0)),    # whole weight
                pl.BlockSpec((1, N), lambda i: (0, 0)),    # whole bias
            ],
            out_specs=pl.BlockSpec((tm, N), lambda i: (i, 0)),
            compiler_params=pltpu.CompilerParams(
                dimension_semantics=("parallel",),
                vmem_limit_bytes=vmem_limit,
            ),
        )(x_c, wt, b2d)
        return out[:M] if Mp != M else out

    # ---------------- Path 3: full M/N/K tiling (large N and/or K) ----------
    tn, tk = _nk_tiles(N, K)
    Kp, Np = wt.shape
    assert Kp == _round_up(K, tk) and Np == _round_up(N, tn), \
        "weight not prepared with prepare_dense_params"

    grid_n = Np // tn
    tm = _pick_tm(M, grid_n, m_align)
    Mp = _round_up(M, tm)
    if (Mp, Kp) != (M, K):
        x_c = jnp.pad(x_c, ((0, Mp - M), (0, Kp - K)))
    grid_m, grid_k = Mp // tm, Kp // tk

    needed = (2 * (tm * tk + tk * tn) * in_isz   # double-buffered x / w tiles
              + 2 * 8 * tn * 4                   # bias block (sublane padded)
              + 2 * tm * tn * out_isz            # double-buffered out tiles
              + tm * tn * 4)                     # f32 accumulator
    vmem_limit = int(min(max(needed + _VMEM_HEADROOM, 16 << 20), _VMEM_CEIL))

    if grid_k == 1:
        # K fits one tile: drop the accumulator scratch + init/finalize.
        out = pl.pallas_call(
            _dense_kernel_fused,
            out_shape=jax.ShapeDtypeStruct((Mp, Np), out_dtype),
            grid=(grid_m, grid_n),
            in_specs=[
                pl.BlockSpec((tm, tk), lambda i, j: (i, 0)),
                pl.BlockSpec((tk, tn), lambda i, j: (0, j)),
                pl.BlockSpec((1, tn), lambda i, j: (0, j)),
            ],
            out_specs=pl.BlockSpec((tm, tn), lambda i, j: (i, j)),
            compiler_params=pltpu.CompilerParams(
                dimension_semantics=("parallel", "parallel"),
                vmem_limit_bytes=vmem_limit,
            ),
        )(x_c, wt, b2d)
    else:
        out = pl.pallas_call(
            _dense_kernel_acc,
            out_shape=jax.ShapeDtypeStruct((Mp, Np), out_dtype),
            grid=(grid_m, grid_n, grid_k),
            in_specs=[
                pl.BlockSpec((tm, tk), lambda i, j, k: (i, k)),   # x
                pl.BlockSpec((tk, tn), lambda i, j, k: (k, j)),   # weight.T
                pl.BlockSpec((1, tn), lambda i, j, k: (0, j)),    # bias
            ],
            out_specs=pl.BlockSpec((tm, tn), lambda i, j, k: (i, j)),
            scratch_shapes=[pltpu.VMEM((tm, tn), jnp.float32)],
            compiler_params=pltpu.CompilerParams(
                dimension_semantics=("parallel", "parallel", "arbitrary"),
                vmem_limit_bytes=vmem_limit,
            ),
        )(x_c, wt, b2d)

    return out[:M, :N]


def dense_forward(x, weight, bias, *, compute_dtype=None):
    """Convenience wrapper matching the PyTorch module call signature.

    NOTE: production entry point is dense_forward_prepared with params
    prepared ONCE; this wrapper re-prepares the weight on every call.
    """
    wt, b2d, n_out, k_in = prepare_dense_params(weight, bias, compute_dtype)
    return dense_forward_prepared(x, wt, b2d, n_out=n_out, k_in=k_in,
                                  compute_dtype=compute_dtype)


# TODO(synk): DenseFunction.backward (grad_input/grad_weight/grad_bias) is not
# implemented here; only the forward pass is translated to Pallas.


if __name__ == "__main__":
    key = jax.random.PRNGKey(0)

    def init_dense(k, in_f, out_f):
        kw, kb = jax.random.split(k)
        w = jax.random.uniform(kw, (out_f, in_f), minval=-0.1, maxval=0.1,
                               dtype=jnp.float32)
        b = jax.random.uniform(kb, (out_f,), minval=-0.1, maxval=0.1,
                               dtype=jnp.float32)
        return w, b

    def ref(x, w, b):
        return jax.nn.sigmoid(x @ w.T + b)

    k0, k1, k2, k3, k4, k5 = jax.random.split(key, 6)

    # 1) Module-sized test (tiny fast path): batch=8, in=32, out=16.
    x1 = jax.random.normal(k0, (8, 32), dtype=jnp.float32)
    w1, b1 = init_dense(k1, 32, 16)
    wt1, bd1, N1, K1 = prepare_dense_params(w1, b1)
    y1 = jax.block_until_ready(
        dense_forward_prepared(x1, wt1, bd1, n_out=N1, k_in=K1))
    assert y1.shape == (8, 16)
    assert jnp.allclose(y1, ref(x1, w1, b1), atol=1e-5, rtol=1e-5)

    # 2) M-only tiling path (weight resident in VMEM, grid over batch rows).
    x2 = jax.random.normal(k2, (300, 256), dtype=jnp.float32)
    w2, b2 = init_dense(k3, 256, 384)
    wt2, bd2, N2, K2 = prepare_dense_params(w2, b2)
    y2 = jax.block_until_ready(
        dense_forward_prepared(x2, wt2, bd2, n_out=N2, k_in=K2))
    assert y2.shape == (300, 384)
    assert jnp.allclose(y2, ref(x2, w2, b2), atol=1e-4, rtol=1e-4)

    # 3) Full M/N/K tiled path with f32 accumulator (large K and N).
    x3 = jax.random.normal(k4, (192, 1280), dtype=jnp.float32)
    w3, b3 = init_dense(k5, 1280, 640)
    wt3, bd3, N3, K3 = prepare_dense_params(w3, b3)
    y3 = jax.block_until_ready(
        dense_forward_prepared(x3, wt3, bd3, n_out=N3, k_in=K3))
    assert y3.shape == (192, 640)
    assert jnp.allclose(y3, ref(x3, w3, b3), atol=1e-4, rtol=1e-4)

    # 4) bf16 MXU-operand path (v6e/v7x rate); f32 accumulation, loose tol.
    wt4, bd4, N4, K4 = prepare_dense_params(w2, b2, compute_dtype=jnp.bfloat16)
    y4 = jax.block_until_ready(
        dense_forward_prepared(x2, wt4, bd4, n_out=N4, k_in=K4,
                               compute_dtype=jnp.bfloat16))
    assert jnp.allclose(y4, ref(x2, w2, b2), atol=2e-2, rtol=2e-2)

    print("KERNEL_OK")
</pallas_src>

<mosaic_0001>
module attributes {stable_mosaic.version = 11 : i64} {
  func.func @_dense_kernel_fused(%arg0: memref<8x32xf32, #tpu.memory_space<vmem>>, %arg1: memref<32x16xf32, #tpu.memory_space<vmem>>, %arg2: memref<1x16xf32, #tpu.memory_space<vmem>>, %arg3: memref<8x16xf32, #tpu.memory_space<vmem>>) attributes {dimension_semantics = [], scalar_prefetch = 0 : i64, scratch_operands = 0 : i64, tpu.core_type = #tpu.core_type<tc>} {
    %c0 = arith.constant 0 : index
    %c0_0 = arith.constant 0 : index
    %0 = vector.load %arg0[%c0, %c0_0] : memref<8x32xf32, #tpu.memory_space<vmem>>, vector<8x32xf32>
    %c0_1 = arith.constant 0 : index
    %c0_2 = arith.constant 0 : index
    %1 = vector.load %arg1[%c0_1, %c0_2] : memref<32x16xf32, #tpu.memory_space<vmem>>, vector<32x16xf32>
    %cst = arith.constant dense<0.000000e+00> : vector<8x16xf32>
    %2 = tpu.matmul %0, %1, %cst {dimension_numbers = #tpu.dot_dimension_numbers<[1], [0], [0], [1], [0, 0, 1, 1], [], []>} : vector<8x32xf32>, vector<32x16xf32>, vector<8x16xf32> -> vector<8x16xf32>
    %c0_3 = arith.constant 0 : index
    %c0_4 = arith.constant 0 : index
    %3 = vector.load %arg2[%c0_3, %c0_4] : memref<1x16xf32, #tpu.memory_space<vmem>>, vector<1x16xf32>
    %4 = vector.broadcast %3 : vector<1x16xf32> to vector<8x16xf32>
    %5 = arith.addf %2, %4 : vector<8x16xf32>
    %6 = arith.negf %5 : vector<8x16xf32>
    %7 = math.exp %6 : vector<8x16xf32>
    %cst_5 = arith.constant 1.000000e+00 : f32
    %8 = vector.broadcast %cst_5 : f32 to vector<8x16xf32>
    %9 = arith.addf %8, %7 : vector<8x16xf32>
    %10 = arith.divf %8, %9 : vector<8x16xf32>
    %c0_6 = arith.constant 0 : index
    %c0_7 = arith.constant 0 : index
    %11 = vector.load %arg3[%c0_6, %c0_7] : memref<8x16xf32, #tpu.memory_space<vmem>>, vector<8x16xf32>
    tpu.vector_store %arg3[%c0_6, %c0_7], %10 {strides = array<i32>} : memref<8x16xf32, #tpu.memory_space<vmem>>, vector<8x16xf32>,
    return
  }
}

</mosaic_0001>

<bundles_post_ra>
// kernel: dense_forward_prepared.1
= control target key start
LH: loop header
LB: loop body
LE: loop exit
PB: predicated region body
PF: predicated region fallthrough
CT: control target
= control target key end

     0   :  { %s161_s0 = inlined_call_operand.vmem [shape: f32[8,32], index: 0, kind: input, shape index: {}]   ;;  %s162_s1 = inlined_call_operand.vmem [shape: f32[32,16], index: 1, kind: input, shape index: {}]   ;;  %s163_s2 = inlined_call_operand.vmem [shape: f32[1,16], index: 2, kind: input, shape index: {}]   ;;  %s164_s3 = inlined_call_operand.hbm [shape: f32[8,16], index: 3, kind: output, shape index: {}]  }
   0x1   :  { %v19_v0 = vld [vmem:[%s162_s1 + $0x18] sm:$0xff]  ;;  %v18_v1 = vld [vmem:[%s162_s1 + $0x10] sm:$0xff]  ;;  %v17_v2 = vld [vmem:[%s162_s1 + $0x8] sm:$0xff] }
   0x2   :  { %40 = vmatpush.msra.mxu0 %v19_v0 }
   0x3   :  { %8 = vsyncpa [#allocation3], 0  ;;  %v16_v3 = vld [vmem:[%s162_s1] sm:$0xff]  ;;  %vm24_vm0 = vcmask 261120   ;;  %vm67_vm4 = vcmask 130048  }
   0x4   :  { %41 = vmatpush.msra.mxu0 %v18_v1  ;;  %v15_v4 = vld [vmem:[%s161_s0] sm:$0xff]  ;;  %s119_s0 = smov [#allocation2]  }
   0x5   :  { %v88_v5 = vld [vmem:[%s163_s2] ss:$0 sm:$0xff]  ;;  %s74_s1 = sshll.u32 %s119_s0, 4  ;;  %s76_s2 = sshll.u32 %s164_s3, 4  ;;  %s75_s1 = int_to_ptr.vmem [resolvable:$true] %s74_s1  ;;  %s77_s2 = int_to_ptr.hbm [resolvable:$true] %s76_s2 }
   0x6   :  { %42 = vmatpush.msra.mxu0 %v17_v2 }
   0x8   :  { %43 = vmatpush.msra.mxu0 %v16_v3 }
   0x9   :  { %85 = vmatmul.msk.f32.vlgmr.msra.gmra.mxu0 %vm24_vm0, %v15_v4 }
  0x86   :  { %v45_v6 = vpop.f32.mrf.mxu0 }
  0x87   :  { %v46_v7 = vadd.f32 %v88_v5, %v45_v6 }
  0x89   :  { %v86_v8 = vmul.f32 -1.442695, %v46_v7 }
  0x8b   :  { %89 = vpow2.f32 %v86_v8 }
  0x91   :  { %v90_v9 = vpop.eup %89 }
  0x92   :  { %v51_v10 = vadd.f32 1.0, %v90_v9 }
  0x94   :  { %91 = vrcp.f32 %v51_v10  ;;  %v63_v14 = vand.u32 2147483648, %v51_v10  ;;  %v61_v16 = vand.u32 2147483647, %v51_v10  ;;  %vm57_vm2 = vweird.f32 %v51_v10 }
  0x96   :  { %v64_v18 = vor.u32 1.1754944e-38, %v63_v14  ;;  %vm62_vm5 = vcmp.eq.f32.partialorder %v61_v16, 8.507059e+37 }
  0x9a   :  { %v92_v11 = vpop.eup %91 }
  0x9b   :  { %v53_v12 = vmul.f32 %v92_v11, %v51_v10  ;;  %vm58_vm1 = vweird.f32 %v92_v11 }
  0x9c   :  { %vm59_vm3 = vmor %vm57_vm2, %vm58_vm1 }
  0x9d   :  { %v54_v13 = vsub.f32 1.0, %v53_v12 }
  0x9f   :  { %v55_v15 = vmul.f32 %v92_v11, %v54_v13 }
  0xa1   :  { %v56_v17 = vadd.f32 %v92_v11, %v55_v15 }
  0xa3   :  { %v60_v19 = vsel %vm59_vm3, %v92_v11, %v56_v17 }
  0xa4   :  { %v65_v20 = vsel %vm62_vm5, %v64_v18, %v60_v19 }
  0xa5   :  { %68 = vst.msk [vmem:[#allocation2] sm:$0xff] %vm67_vm4, %v65_v20 }
  0xa6   :  { %79 = dma.vmem_to_hbm [thread:$0]  %s75_s1, 128, %s77_s2, [#allocation3]  }
  0xa7   :  { %117 = dma.done.wait [#allocation3], 128  }
  0xa8   :  { %118 = vsyncadd [#allocation3], 4294967168 }
  0xa9   :  { %84 = vsyncpa [#allocation3], 1 }

</bundles_post_ra>
